<compile_context>
chip_gen: v5e
topology: v5e:2x2
jax: 0.10.0
libtpu: 0.0.40
codegen_flags: <defaults>
</compile_context>

<pallas_src>
import numpy as np
import jax
import jax.numpy as jnp
from jax.experimental import pallas as pl
from jax.experimental.pallas import tpu as pltpu


# ---------------- model configuration (small, consistent with the module) ----------------
BATCH = 8
DATA_DIM = 32
NUM_COMPONENTS = 16
NUM_LAYERS = 3
NUM_CLASSES = 10
MAXOUT_K = 2

# list_hidden_nodes = [num_components*2]*(num_layers-1) + [num_components]
LIST_HIDDEN = [NUM_COMPONENTS * 2] * (NUM_LAYERS - 1) + [NUM_COMPONENTS]   # [32, 32, 16]
H0, H1, H2 = LIST_HIDDEN

LANES = 128  # padded lane width for the tail (last hidden + prediction head)

# ---- packed weight-slab row layout (all row offsets are multiples of 8) ----
#   [R_W0A : +DATA_DIM)  w0a  (DATA_DIM, H0)   in lanes [0:H0)
#   [R_W0B : +DATA_DIM)  w0b  (DATA_DIM, H0)
#   [R_W1A : +H0)        w1a  (H0, H1)
#   [R_W1B : +H0)        w1b  (H0, H1)
#   [R_W2  : +H1)        w2   (H1, H2)  zero-padded to LANES columns
#   [R_WP  : +LANES)     wp   (H2, NUM_CLASSES) zero-padded to (LANES, LANES)
R_W0A = 0
R_W0B = R_W0A + DATA_DIM
R_W1A = R_W0B + DATA_DIM
R_W1B = R_W1A + H0
R_W2 = R_W1B + H0
R_WP = R_W2 + H1
W_ROWS = R_WP + LANES          # 288

# ---- packed bias-slab row layout (shape (8, LANES)) ----
#   row 0: b0a   row 1: b0b   row 2: b1a   row 3: b1b
#   row 4: b2 (lanes [0:H2), rest 0)   row 5: bp (lanes [0:NUM_CLASSES), rest 0)
B_ROWS = 8


# ---------------- Pallas kernel: full TCL forward --------------------------------------
def tcl_kernel(x_ref, w_ref, b_ref, out_ref):
    x = x_ref[...]                                               # (B, DATA_DIM)

    # hidden layer 0: maxout(k=2) via two lane-aligned dots
    w0a = w_ref[R_W0A:R_W0A + DATA_DIM, 0:H0]
    w0b = w_ref[R_W0B:R_W0B + DATA_DIM, 0:H0]
    b0a = b_ref[0:1, 0:H0]
    b0b = b_ref[1:2, 0:H0]
    h0 = jnp.maximum(
        jnp.dot(x, w0a, preferred_element_type=jnp.float32) + b0a,
        jnp.dot(x, w0b, preferred_element_type=jnp.float32) + b0b)

    # hidden layer 1: maxout(k=2)
    w1a = w_ref[R_W1A:R_W1A + H0, 0:H1]
    w1b = w_ref[R_W1B:R_W1B + H0, 0:H1]
    b1a = b_ref[2:3, 0:H1]
    b1b = b_ref[3:4, 0:H1]
    h1 = jnp.maximum(
        jnp.dot(h0, w1a, preferred_element_type=jnp.float32) + b1a,
        jnp.dot(h0, w1b, preferred_element_type=jnp.float32) + b1b)

    # last hidden layer: Linear + Abs, computed at padded 128-lane width
    w2 = w_ref[R_W2:R_W2 + H1, :]                                # (H1, LANES), cols >= H2 zero
    b2 = b_ref[4:5, :]                                           # (1, LANES), lanes >= H2 zero
    feats = jnp.abs(jnp.dot(h1, w2, preferred_element_type=jnp.float32) + b2)   # (B, LANES)

    # prediction head: Linear (padded rows/cols of wp are zero, padded bp lanes zero)
    wp = w_ref[R_WP:R_WP + LANES, :]                             # (LANES, LANES)
    bp = b_ref[5:6, :]                                           # (1, LANES)
    logits = jnp.dot(feats, wp, preferred_element_type=jnp.float32) + bp        # (B, LANES)

    # one lane-dense output slab: [0] = padded logits, [1] = padded feats
    out_ref[0, :, :] = logits
    out_ref[1, :, :] = feats


def tcl_forward(x, w_slab, b_slab):
    vmem = pl.BlockSpec(memory_space=pltpu.MemorySpace.VMEM)
    packed = pl.pallas_call(
        tcl_kernel,
        in_specs=[vmem, vmem, vmem],
        out_specs=vmem,
        out_shape=jax.ShapeDtypeStruct((2, x.shape[0], LANES), jnp.float32),
    )(x, w_slab, b_slab)
    logits = packed[0, :, :NUM_CLASSES]
    feats = packed[1, :, :NUM_COMPONENTS]
    return logits, feats


# ---------------- parameter setup (deterministic, host-side glue) -----------------------
def make_linear(key, in_dim, out_dim):
    """Deterministic init ~ PyTorch Linear default: U(-1/sqrt(in), 1/sqrt(in)).
    Weight stored as [in_dim, out_dim] so y = x @ W + b."""
    kw, kb = jax.random.split(key)
    bound = 1.0 / np.sqrt(in_dim)
    w = jax.random.uniform(kw, (in_dim, out_dim), jnp.float32, -bound, bound)
    b = jax.random.uniform(kb, (out_dim,), jnp.float32, -bound, bound)
    return w, b


def build_params(key):
    keys = jax.random.split(key, 4)
    w0, b0 = make_linear(keys[0], DATA_DIM, MAXOUT_K * H0)
    w1, b1 = make_linear(keys[1], H0, MAXOUT_K * H1)
    w2, b2 = make_linear(keys[2], H1, H2)
    wp, bp = make_linear(keys[3], H2, NUM_CLASSES)

    # original (un-split) params for the pure-JAX reference
    orig = dict(w0=w0, b0=b0, w1=w1, b1=b1, w2=w2, b2=b2, wp=wp, bp=bp)

    # torch maxout groups are consecutive: group g uses columns g*k + j  (j = 0..k-1),
    # so affine map j of every group is the strided column set [j::k].
    w0_np, b0_np = np.asarray(w0), np.asarray(b0)
    w1_np, b1_np = np.asarray(w1), np.asarray(b1)
    w0a, w0b = w0_np[:, 0::MAXOUT_K], w0_np[:, 1::MAXOUT_K]
    b0a, b0b = b0_np[0::MAXOUT_K], b0_np[1::MAXOUT_K]
    w1a, w1b = w1_np[:, 0::MAXOUT_K], w1_np[:, 1::MAXOUT_K]
    b1a, b1b = b1_np[0::MAXOUT_K], b1_np[1::MAXOUT_K]

    # pack all weights into one zero-padded (W_ROWS, LANES) slab
    w_slab = np.zeros((W_ROWS, LANES), np.float32)
    w_slab[R_W0A:R_W0A + DATA_DIM, 0:H0] = w0a
    w_slab[R_W0B:R_W0B + DATA_DIM, 0:H0] = w0b
    w_slab[R_W1A:R_W1A + H0, 0:H1] = w1a
    w_slab[R_W1B:R_W1B + H0, 0:H1] = w1b
    w_slab[R_W2:R_W2 + H1, 0:H2] = np.asarray(w2)
    w_slab[R_WP:R_WP + H2, 0:NUM_CLASSES] = np.asarray(wp)

    # pack all biases into one (8, LANES) slab (padding lanes are 0: |0|=0 for feats,
    # and zero-padded wp rows / bp lanes keep padded logits lanes at 0)
    b_slab = np.zeros((B_ROWS, LANES), np.float32)
    b_slab[0, 0:H0] = b0a
    b_slab[1, 0:H0] = b0b
    b_slab[2, 0:H1] = b1a
    b_slab[3, 0:H1] = b1b
    b_slab[4, 0:H2] = np.asarray(b2)
    b_slab[5, 0:NUM_CLASSES] = np.asarray(bp)

    return orig, jnp.asarray(w_slab), jnp.asarray(b_slab)


# ---------------- pure-JAX reference (mirrors the PyTorch forward exactly) --------------
def reference_forward(x, p):
    def maxout(y, k):
        b, c = y.shape
        return jnp.max(y.reshape(b, c // k, k), axis=2)

    h = maxout(x @ p["w0"] + p["b0"], MAXOUT_K)
    h = maxout(h @ p["w1"] + p["b1"], MAXOUT_K)
    feats = jnp.abs(h @ p["w2"] + p["b2"])
    logits = feats @ p["wp"] + p["bp"]
    return logits, feats


if __name__ == "__main__":
    key = jax.random.PRNGKey(0)
    kx, kp = jax.random.split(key)

    x = jax.random.normal(kx, (BATCH, DATA_DIM), jnp.float32)
    orig_params, w_slab, b_slab = build_params(kp)

    logits, feats = tcl_forward(x, w_slab, b_slab)
    jax.block_until_ready((logits, feats))

    ref_logits, ref_feats = reference_forward(x, orig_params)
    assert logits.shape == (BATCH, NUM_CLASSES) and feats.shape == (BATCH, NUM_COMPONENTS)
    assert np.allclose(np.asarray(logits), np.asarray(ref_logits), atol=1e-4, rtol=1e-4)
    assert np.allclose(np.asarray(feats), np.asarray(ref_feats), atol=1e-4, rtol=1e-4)

    print("KERNEL_OK")
</pallas_src>

<mosaic_0001>
module attributes {stable_mosaic.version = 11 : i64} {
  func.func @tcl_kernel(%arg0: memref<8x32xf32, #tpu.memory_space<vmem>>, %arg1: memref<288x128xf32, #tpu.memory_space<vmem>>, %arg2: memref<8x128xf32, #tpu.memory_space<vmem>>, %arg3: memref<2x8x128xf32, #tpu.memory_space<vmem>>) attributes {dimension_semantics = [], scalar_prefetch = 0 : i64, scratch_operands = 0 : i64, tpu.core_type = #tpu.core_type<tc>} {
    %c0 = arith.constant 0 : index
    %c0_0 = arith.constant 0 : index
    %0 = vector.load %arg0[%c0, %c0_0] : memref<8x32xf32, #tpu.memory_space<vmem>>, vector<8x32xf32>
    %c0_1 = arith.constant 0 : index
    %c0_2 = arith.constant 0 : index
    %1 = vector.load %arg1[%c0_1, %c0_2] : memref<288x128xf32, #tpu.memory_space<vmem>>, vector<32x32xf32>
    %c32 = arith.constant 32 : index
    %c0_3 = arith.constant 0 : index
    %2 = vector.load %arg1[%c32, %c0_3] : memref<288x128xf32, #tpu.memory_space<vmem>>, vector<32x32xf32>
    %c0_4 = arith.constant 0 : index
    %c0_5 = arith.constant 0 : index
    %3 = vector.load %arg2[%c0_4, %c0_5] : memref<8x128xf32, #tpu.memory_space<vmem>>, vector<1x32xf32>
    %c1 = arith.constant 1 : index
    %c0_6 = arith.constant 0 : index
    %4 = vector.load %arg2[%c1, %c0_6] : memref<8x128xf32, #tpu.memory_space<vmem>>, vector<1x32xf32>
    %cst = arith.constant dense<0.000000e+00> : vector<8x32xf32>
    %5 = tpu.matmul %0, %1, %cst {dimension_numbers = #tpu.dot_dimension_numbers<[1], [0], [0], [1], [0, 0, 1, 1], [], []>} : vector<8x32xf32>, vector<32x32xf32>, vector<8x32xf32> -> vector<8x32xf32>
    %6 = vector.broadcast %3 : vector<1x32xf32> to vector<8x32xf32>
    %7 = arith.addf %5, %6 : vector<8x32xf32>
    %cst_7 = arith.constant dense<0.000000e+00> : vector<8x32xf32>
    %8 = tpu.matmul %0, %2, %cst_7 {dimension_numbers = #tpu.dot_dimension_numbers<[1], [0], [0], [1], [0, 0, 1, 1], [], []>} : vector<8x32xf32>, vector<32x32xf32>, vector<8x32xf32> -> vector<8x32xf32>
    %9 = vector.broadcast %4 : vector<1x32xf32> to vector<8x32xf32>
    %10 = arith.addf %8, %9 : vector<8x32xf32>
    %11 = arith.maximumf %7, %10 : vector<8x32xf32>
    %c64 = arith.constant 64 : index
    %c0_8 = arith.constant 0 : index
    %12 = vector.load %arg1[%c64, %c0_8] : memref<288x128xf32, #tpu.memory_space<vmem>>, vector<32x32xf32>
    %c96 = arith.constant 96 : index
    %c0_9 = arith.constant 0 : index
    %13 = vector.load %arg1[%c96, %c0_9] : memref<288x128xf32, #tpu.memory_space<vmem>>, vector<32x32xf32>
    %c2 = arith.constant 2 : index
    %c0_10 = arith.constant 0 : index
    %14 = vector.load %arg2[%c2, %c0_10] : memref<8x128xf32, #tpu.memory_space<vmem>>, vector<1x32xf32>
    %c3 = arith.constant 3 : index
    %c0_11 = arith.constant 0 : index
    %15 = vector.load %arg2[%c3, %c0_11] : memref<8x128xf32, #tpu.memory_space<vmem>>, vector<1x32xf32>
    %cst_12 = arith.constant dense<0.000000e+00> : vector<8x32xf32>
    %16 = tpu.matmul %11, %12, %cst_12 {dimension_numbers = #tpu.dot_dimension_numbers<[1], [0], [0], [1], [0, 0, 1, 1], [], []>} : vector<8x32xf32>, vector<32x32xf32>, vector<8x32xf32> -> vector<8x32xf32>
    %17 = vector.broadcast %14 : vector<1x32xf32> to vector<8x32xf32>
    %18 = arith.addf %16, %17 : vector<8x32xf32>
    %cst_13 = arith.constant dense<0.000000e+00> : vector<8x32xf32>
    %19 = tpu.matmul %11, %13, %cst_13 {dimension_numbers = #tpu.dot_dimension_numbers<[1], [0], [0], [1], [0, 0, 1, 1], [], []>} : vector<8x32xf32>, vector<32x32xf32>, vector<8x32xf32> -> vector<8x32xf32>
    %20 = vector.broadcast %15 : vector<1x32xf32> to vector<8x32xf32>
    %21 = arith.addf %19, %20 : vector<8x32xf32>
    %22 = arith.maximumf %18, %21 : vector<8x32xf32>
    %c128 = arith.constant 128 : index
    %c0_14 = arith.constant 0 : index
    %23 = vector.load %arg1[%c128, %c0_14] : memref<288x128xf32, #tpu.memory_space<vmem>>, vector<32x128xf32>
    %c4 = arith.constant 4 : index
    %c0_15 = arith.constant 0 : index
    %24 = vector.load %arg2[%c4, %c0_15] : memref<8x128xf32, #tpu.memory_space<vmem>>, vector<1x128xf32>
    %cst_16 = arith.constant dense<0.000000e+00> : vector<8x128xf32>
    %25 = tpu.matmul %22, %23, %cst_16 {dimension_numbers = #tpu.dot_dimension_numbers<[1], [0], [0], [1], [0, 0, 1, 1], [], []>} : vector<8x32xf32>, vector<32x128xf32>, vector<8x128xf32> -> vector<8x128xf32>
    %26 = vector.broadcast %24 : vector<1x128xf32> to vector<8x128xf32>
    %27 = arith.addf %25, %26 : vector<8x128xf32>
    %28 = math.absf %27 : vector<8x128xf32>
    %c160 = arith.constant 160 : index
    %c0_17 = arith.constant 0 : index
    %29 = vector.load %arg1[%c160, %c0_17] : memref<288x128xf32, #tpu.memory_space<vmem>>, vector<128x128xf32>
    %c5 = arith.constant 5 : index
    %c0_18 = arith.constant 0 : index
    %30 = vector.load %arg2[%c5, %c0_18] : memref<8x128xf32, #tpu.memory_space<vmem>>, vector<1x128xf32>
    %cst_19 = arith.constant dense<0.000000e+00> : vector<8x128xf32>
    %31 = tpu.matmul %28, %29, %cst_19 {dimension_numbers = #tpu.dot_dimension_numbers<[1], [0], [0], [1], [0, 0, 1, 1], [], []>} : vector<8x128xf32>, vector<128x128xf32>, vector<8x128xf32> -> vector<8x128xf32>
    %32 = vector.broadcast %30 : vector<1x128xf32> to vector<8x128xf32>
    %33 = arith.addf %31, %32 : vector<8x128xf32>
    %c0_20 = arith.constant 0 : index
    %c0_21 = arith.constant 0 : index
    %c0_22 = arith.constant 0 : index
    %34 = vector.load %arg3[%c0_20, %c0_21, %c0_22] : memref<2x8x128xf32, #tpu.memory_space<vmem>>, vector<1x8x128xf32>
    %35 = vector.shape_cast %34 : vector<1x8x128xf32> to vector<8x128xf32>
    %36 = vector.shape_cast %33 : vector<8x128xf32> to vector<1x8x128xf32>
    tpu.vector_store %arg3[%c0_20, %c0_21, %c0_22], %36 {strides = array<i32>} : memref<2x8x128xf32, #tpu.memory_space<vmem>>, vector<1x8x128xf32>,
    %c1_23 = arith.constant 1 : index
    %c0_24 = arith.constant 0 : index
    %c0_25 = arith.constant 0 : index
    %37 = vector.load %arg3[%c1_23, %c0_24, %c0_25] : memref<2x8x128xf32, #tpu.memory_space<vmem>>, vector<1x8x128xf32>
    %38 = vector.shape_cast %37 : vector<1x8x128xf32> to vector<8x128xf32>
    %39 = vector.shape_cast %28 : vector<8x128xf32> to vector<1x8x128xf32>
    tpu.vector_store %arg3[%c1_23, %c0_24, %c0_25], %39 {strides = array<i32>} : memref<2x8x128xf32, #tpu.memory_space<vmem>>, vector<1x8x128xf32>,
    return
  }
}

</mosaic_0001>

<bundles_post_ra>
// kernel: tpu_custom_call.1
= control target key start
LH: loop header
LB: loop body
LE: loop exit
PB: predicated region body
PF: predicated region fallthrough
CT: control target
= control target key end

     0   :  { %8 = vsyncpa [#allocation3], 0  ;;  %s431_s0 = inlined_call_operand.hbm [shape: f32[8,32], index: 0, kind: input, shape index: {}]   ;;  %s432_s1 = inlined_call_operand.hbm [shape: f32[288,128], index: 1, kind: input, shape index: {}]   ;;  %s433_s2 = inlined_call_operand.hbm [shape: f32[8,128], index: 2, kind: input, shape index: {}]   ;;  %s434_s3 = inlined_call_operand.hbm [shape: f32[2,8,128], index: 3, kind: output, shape index: {}]  }
   0x1   :  { %9 = vsyncpa [#allocation6], 0  ;;  %s26_s14 = sshll.u32 %s432_s1, 4  ;;  %s27_s14 = int_to_ptr.hbm [resolvable:$true] %s26_s14 }
   0x2   :  { %10 = vsyncpa [#allocation4], 0  ;;  %s382_s15 = smov [#allocation5]   ;;  %s16_s19 = sshll.u32 %s431_s0, 4  ;;  %s17_s19 = int_to_ptr.hbm [resolvable:$true] %s16_s19 }
   0x3   :  { %s28_s16 = sshll.u32 %s382_s15, 4  ;;  %s383_s20 = smov 128   ;;  %s29_s16 = int_to_ptr.vmem [resolvable:$true] %s28_s16 }
   0x4   :  { %s384_s21 = smov 8   ;;  %s385_s22 = smov [#allocation2]  }
   0x5   :  { %34 = dma.hbm_to_vmem [thread:$0]  %s27_s14, 4608, %s29_s16, [#allocation6], %s383_s20, %s383_s20, %s384_s21  }
   0x6   :  { %s18_s23 = sshll.u32 %s385_s22, 4  ;;  %s40_s25 = sshll.u32 %s433_s2, 4  ;;  %s19_s23 = int_to_ptr.vmem [resolvable:$true] %s18_s23  ;;  %s41_s25 = int_to_ptr.hbm [resolvable:$true] %s40_s25 }
   0x7   :  { %21 = dma.hbm_to_vmem [thread:$0]  %s17_s19, 128, %s19_s23, [#allocation3]  }
   0x8   :  { %s386_s26 = smov [#allocation7]  }
   0x9   :  { %s42_s27 = sshll.u32 %s386_s26, 4  ;;  %s43_s27 = int_to_ptr.vmem [resolvable:$true] %s42_s27 }
   0xa   :  { %45 = dma.hbm_to_vmem [thread:$0]  %s41_s25, 128, %s43_s27, [#allocation6]  }
   0xb   :  { %376 = dma.done.wait [#allocation3], 128  }
   0xc   :  { %377 = vsyncadd [#allocation3], 4294967168 }
   0xd   :  { %378 = dma.done.wait [#allocation6], 4736  }
   0xe   :  { %379 = vsyncadd [#allocation6], 4294962560  ;;  %v66_v0 = vld [vmem:[#allocation5 + $0x38] sm:$0xff]  ;;  %v65_v1 = vld [vmem:[#allocation5 + $0x30] sm:$0xff]  ;;  %vm70_vm0 = vcmask 261120   ;;  %s387_s0 = smov [#allocation8]  }
   0xf   :  { %107 = vmatpush.msra.mxu2 %v66_v0  ;;  %v62_v2 = vld [vmem:[#allocation5 + $0x18] sm:$0xff]  ;;  %v64_v3 = vld [vmem:[#allocation5 + $0x28] sm:$0xff]  ;;  %v63_v4 = vld [vmem:[#allocation5 + $0x20] sm:$0xff]  ;;  %s247_s2 = sshll.u32 %s387_s0, 4  ;;  %s249_s30 = sshll.u32 %s434_s3, 4  ;;  %s248_s2 = int_to_ptr.vmem [resolvable:$true] %s247_s2  ;;  %s250_s30 = int_to_ptr.hbm [resolvable:$true] %s249_s30 }
  0x10   :  { %86 = vmatpush.msra.mxu0 %v62_v2  ;;  %v61_v5 = vld [vmem:[#allocation5 + $0x10] sm:$0xff]  ;;  %v58_v6 = vld [vmem:[#allocation2] sm:$0xff]  ;;  %v60_v7 = vld [vmem:[#allocation5 + $0x8] sm:$0xff] }
  0x11   :  { %108 = vmatpush.msra.mxu2 %v65_v1  ;;  %v123_v8 = vld [vmem:[#allocation5 + $0x78] sm:$0xff]  ;;  %v59_v9 = vld [vmem:[#allocation5] sm:$0xff]  ;;  %v118_v11 = vld [vmem:[#allocation5 + $0x50] sm:$0xff] }
  0x12   :  { %87 = vmatpush.msra.mxu0 %v61_v5  ;;  %163 = vmatpush.msra.mxu3 %v123_v8  ;;  %v119_v10 = vld [vmem:[#allocation5 + $0x58] sm:$0xff]  ;;  %v122_v12 = vld [vmem:[#allocation5 + $0x70] sm:$0xff]  ;;  %v117_v13 = vld [vmem:[#allocation5 + $0x48] sm:$0xff] }
  0x13   :  { %109 = vmatpush.msra.mxu2 %v64_v3  ;;  %v121_v14 = vld [vmem:[#allocation5 + $0x68] sm:$0xff]  ;;  %v116_v15 = vld [vmem:[#allocation5 + $0x40] sm:$0xff]  ;;  %v175_v17 = vld [vmem:[#allocation5 + $0x98] sm:$0xff] }
  0x14   :  { %88 = vmatpush.msra.mxu0 %v60_v7  ;;  %164 = vmatpush.msra.mxu3 %v122_v12  ;;  %v120_v16 = vld [vmem:[#allocation5 + $0x60] sm:$0xff]  ;;  %v174_v18 = vld [vmem:[#allocation5 + $0x90] sm:$0xff]  ;;  %v173_v26 = vld [vmem:[#allocation5 + $0x88] sm:$0xff] }
  0x15   :  { %110 = vmatpush.msra.mxu2 %v63_v4  ;;  %v274_v19 = vld [vmem:[#allocation7] ss:$0 sm:$0xff]  ;;  %v275_v21 = vld [vmem:[#allocation7 + $0x1] ss:$0 sm:$0xff]  ;;  %v217_v28 = vld [vmem:[#allocation5 + $0x118] sm:$0xff] }
  0x16   :  { %264 = vmatmul.msk.f32.vlgmr.msra.gmra.mxu2 %vm70_vm0, %v58_v6  ;;  %89 = vmatpush.msra.mxu0 %v59_v9  ;;  %v172_v27 = vld [vmem:[#allocation5 + $0x80] sm:$0xff]  ;;  %v216_v29 = vld [vmem:[#allocation5 + $0x110] sm:$0xff]  ;;  %v215_v30 = vld [vmem:[#allocation5 + $0x108] sm:$0xff] }
  0x17   :  { %263 = vmatmul.msk.f32.vlgmr.msra.gmra.mxu0 %vm70_vm0, %v58_v6  ;;  %142 = vmatpush.msrb.mxu2 %v119_v10  ;;  %v214_v31 = vld [vmem:[#allocation5 + $0x100] sm:$0xff]  ;;  %v213_v32 = vld [vmem:[#allocation5 + $0xf8] sm:$0xff]  ;;  %v212_v33 = vld [vmem:[#allocation5 + $0xf0] sm:$0xff] }
  0x18   :  { %165 = vmatpush.msra.mxu3 %v121_v14  ;;  %193 = vmatpush.msrb.mxu0 %v175_v17  ;;  %v211_v34 = vld [vmem:[#allocation5 + $0xe8] sm:$0xff]  ;;  %v210_v35 = vld [vmem:[#allocation5 + $0xe0] sm:$0xff]  ;;  %v209_v36 = vld [vmem:[#allocation5 + $0xd8] sm:$0xff] }
  0x19   :  { %143 = vmatpush.msrb.mxu2 %v118_v11  ;;  %220 = vmatpush.msra.mxu1 %v217_v28  ;;  %v208_v37 = vld [vmem:[#allocation5 + $0xd0] sm:$0xff]  ;;  %v207_v38 = vld [vmem:[#allocation5 + $0xc8] sm:$0xff]  ;;  %v206_v39 = vld [vmem:[#allocation5 + $0xc0] sm:$0xff] }
  0x1a   :  { %166 = vmatpush.msra.mxu3 %v120_v16  ;;  %194 = vmatpush.msrb.mxu0 %v174_v18  ;;  %v205_v40 = vld [vmem:[#allocation5 + $0xb8] sm:$0xff]  ;;  %v276_v41 = vld [vmem:[#allocation7 + $0x2] ss:$0 sm:$0xff]  ;;  %v277_v42 = vld [vmem:[#allocation7 + $0x3] ss:$0 sm:$0xff] }
  0x1b   :  { %144 = vmatpush.msrb.mxu2 %v117_v13  ;;  %221 = vmatpush.msra.mxu1 %v216_v29  ;;  %v204_v48 = vld [vmem:[#allocation5 + $0xb0] sm:$0xff]  ;;  %v203_v49 = vld [vmem:[#allocation5 + $0xa8] sm:$0xff]  ;;  %v202_v50 = vld [vmem:[#allocation5 + $0xa0] sm:$0xff] }
  0x1c   :  { %195 = vmatpush.msrb.mxu0 %v173_v26  ;;  %v278_v51 = vld [vmem:[#allocation7 + $0x4] ss:$0 sm:$0xff]  ;;  %v279_v55 = vld [vmem:[#allocation7 + $0x5] ss:$0 sm:$0xff] }
  0x1d   :  { %145 = vmatpush.msrb.mxu2 %v116_v15  ;;  %222 = vmatpush.msra.mxu1 %v215_v30 }
  0x1e   :  { %196 = vmatpush.msrb.mxu0 %v172_v27 }
  0x1f   :  { %223 = vmatpush.msra.mxu1 %v214_v31 }
  0x21   :  { %224 = vmatpush.msra.mxu1 %v213_v32 }
  0x23   :  { %225 = vmatpush.msra.mxu1 %v212_v33 }
  0x25   :  { %226 = vmatpush.msra.mxu1 %v211_v34 }
  0x27   :  { %227 = vmatpush.msra.mxu1 %v210_v35 }
  0x29   :  { %228 = vmatpush.msra.mxu1 %v209_v36 }
  0x2b   :  { %229 = vmatpush.msra.mxu1 %v208_v37 }
  0x2d   :  { %230 = vmatpush.msra.mxu1 %v207_v38 }
  0x2f   :  { %231 = vmatpush.msra.mxu1 %v206_v39 }
  0x31   :  { %232 = vmatpush.msra.mxu1 %v205_v40 }
  0x33   :  { %233 = vmatpush.msra.mxu1 %v204_v48 }
  0x35   :  { %234 = vmatpush.msra.mxu1 %v203_v49 }
  0x37   :  { %235 = vmatpush.msra.mxu1 %v202_v50 }
  0x94   :  { %v91_v20 = vpop.f32.mrf.mxu0 }
  0x95   :  { %v92_v22 = vadd.f32 %v274_v19, %v91_v20 }
  0x99   :  { %v112_v23 = vpop.f32.mrf.mxu2 }
  0x9a   :  { %v113_v24 = vadd.f32 %v275_v21, %v112_v23 }
  0x9c   :  { %v115_v25 = vmax.f32 %v92_v22, %v113_v24 }
  0x9e   :  { %265 = vmatmul.msk.f32.vlgmr.msrb.gmra.mxu2 %vm70_vm0, %v115_v25  ;;  %266 = vmatmul.msk.f32.vlgmr.msra.gmra.mxu3 %vm70_vm0, %v115_v25 }
 0x121   :  { %v147_v43 = vpop.f32.mrf.mxu2  ;;  %v168_v44 = vpop.f32.mrf.mxu3 }
 0x122   :  { %v148_v45 = vadd.f32 %v276_v41, %v147_v43  ;;  %v169_v46 = vadd.f32 %v277_v42, %v168_v44 }
 0x124   :  { %v171_v47 = vmax.f32 %v148_v45, %v169_v46 }
 0x126   :  { %267 = vmatmul.msk.f32.vlgmr.msrb.gmra.mxu0 %vm70_vm0, %v171_v47 }
 0x1a3   :  { %v198_v52 = vpop.f32.mrf.mxu0 }
 0x1a4   :  { %v199_v53 = vadd.f32 %v278_v51, %v198_v52 }
 0x1a6   :  { %v201_v54 = vand.u32 2147483647, %v199_v53 }
 0x1a8   :  { %242 = vst [vmem:[#allocation8 + $0x8] sm:$0xff] %v201_v54  ;;  %236 = vmatmul.f32.vlgmr.msra.gmra.mxu1 %v201_v54 }
 0x225   :  { %v237_v56 = vpop.f32.mrf.mxu1 }
 0x226   :  { %v238_v57 = vadd.f32 %v279_v55, %v237_v56 }
 0x228   :  { %240 = vst [vmem:[#allocation8] sm:$0xff] %v238_v57 }
 0x229   :  { %255 = dma.vmem_to_hbm [thread:$0]  %s248_s2, 256, %s250_s30, [#allocation4], %s383_s20, %s383_s20, %s384_s21  }
 0x22a   :  { %380 = dma.done.wait [#allocation4], 256  }
 0x22b   :  { %381 = vsyncadd [#allocation4], 4294967040 }
 0x22c   :  { %260 = vsyncpa [#allocation3], 1 }
 0x22d   :  { %261 = vsyncpa [#allocation6], 1 }
 0x22e   :  { %262 = vsyncpa [#allocation4], 1 }

</bundles_post_ra>
